<compile_context>
chip_gen: v5e
topology: v5e:2x2
jax: 0.10.0
libtpu: 0.0.40
codegen_flags: <defaults>
</compile_context>

<pallas_src>
import functools

import jax
import jax.numpy as jnp
from jax.experimental import pallas as pl
from jax.experimental.pallas import tpu as pltpu

# ------------------------- model hyper-parameters -------------------------
NUM_EMBEDDINGS = 6000
EMBED_DIM = 16          # conv in_channels
OUT_CHANNELS = 64
KERNEL_SIZE = 3
STRIDE = 2
UNITS = 256


def cnn_kernel(tok_ref, table_ref, wc_ref, w1_ref, w2_ref, bias_ref, out_ref,
               *, tb, seq_len, l_out):
    """Fused forward for one batch tile of `tb` sequences.

    tok_ref   : (B_pad, L)  int32  SMEM (scalar prefetch)  token ids
    table_ref : (V, E)      f32    VMEM (resident)         embedding table
    wc_ref    : (K*E, C)    bf16   VMEM (resident)         conv weight, (k,c_in) flat
    w1_ref    : (C, UNITS)  bf16   VMEM (resident)         linear1 weight (transposed)
    w2_ref    : (1, UNITS)  f32    VMEM (resident)         linear2 weight row
    bias_ref  : (3, UNITS)  f32    VMEM (resident)         [conv_b | lin1_b | lin2_b]
    out_ref   : (tb, 1)     f32                            sigmoid output tile
    """
    i = pl.program_id(0)

    # ---- fused embedding gather: dynamic row loads from the VMEM table ----
    rows = []
    for b in range(tb):
        rows.append([table_ref[pl.ds(tok_ref[i * tb + b, t], 1), :]   # (1, E) f32
                     for t in range(seq_len)])

    # ---- fused im2col: tap-major lane concat, flattened to 2-D rows ----
    patch_rows = []
    for b in range(tb):
        for t in range(l_out):
            patch_rows.append(jnp.concatenate(
                [rows[b][STRIDE * t + k] for k in range(KERNEL_SIZE)], axis=1))
    patches = jnp.concatenate(patch_rows, axis=0)              # (tb*l_out, K*E) f32

    # ---- conv1d(stride=2) as ONE 2-D MXU matmul (bf16 in, f32 acc) ----
    conv = jnp.dot(patches.astype(jnp.bfloat16), wc_ref[...],
                   preferred_element_type=jnp.float32)          # (tb*l_out, C)
    conv = jnp.maximum(conv + bias_ref[0:1, :OUT_CHANNELS], 0.0)   # bias + ReLU

    # ---- torch.max(x, dim=2)[0]: global max over time, per batch row ----
    pooled = jnp.concatenate(
        [jnp.max(conv[b * l_out:(b + 1) * l_out, :], axis=0, keepdims=True)
         for b in range(tb)], axis=0)                           # (tb, C) f32

    # ---- linear1 + ReLU (bf16 MXU, f32 acc) ----
    h = jnp.dot(pooled.astype(jnp.bfloat16), w1_ref[...],
                preferred_element_type=jnp.float32) + bias_ref[1:2, :]
    h = jnp.maximum(h, 0.0)                                     # (tb, UNITS)

    # ---- linear2 (out_features=1) as VPU multiply + lane reduce (no N=1 MXU op) ----
    logits = jnp.sum(h * w2_ref[...], axis=-1, keepdims=True) + bias_ref[2:3, 0:1]
    out_ref[...] = jax.nn.sigmoid(logits)                       # (tb, 1)


def init_params(key):
    """Deterministic parameter init (shapes match the PyTorch module)."""
    ks = jax.random.split(key, 7)
    p = {}
    p["embedding"] = jax.random.normal(ks[0], (NUM_EMBEDDINGS, EMBED_DIM),
                                       jnp.float32) * 0.1
    # torch Conv1d weight: (out_channels, in_channels, kernel_size)
    p["conv_w"] = jax.random.normal(
        ks[1], (OUT_CHANNELS, EMBED_DIM, KERNEL_SIZE), jnp.float32) * 0.1
    p["conv_b"] = jax.random.normal(ks[2], (OUT_CHANNELS,), jnp.float32) * 0.01
    # torch Linear weight: (out_features, in_features)
    p["lin1_w"] = jax.random.normal(ks[3], (UNITS, OUT_CHANNELS),
                                    jnp.float32) * 0.05
    p["lin1_b"] = jax.random.normal(ks[4], (UNITS,), jnp.float32) * 0.01
    p["lin2_w"] = jax.random.normal(ks[5], (1, UNITS), jnp.float32) * 0.05
    p["lin2_b"] = jax.random.normal(ks[6], (1,), jnp.float32) * 0.01
    return p


def cnn_forward(tokens, params, *, batch_tile=8):
    """tokens: (B, L) int32 indices -> (B, 1) f32 probabilities."""
    B, L = tokens.shape
    l_out = (L - KERNEL_SIZE) // STRIDE + 1

    tb = min(batch_tile, B)
    g = pl.cdiv(B, tb)
    b_pad = g * tb
    tokens = tokens.astype(jnp.int32)
    if b_pad != B:
        tokens = jnp.pad(tokens, ((0, b_pad - B), (0, 0)))     # pad rows use token 0

    # --- weight re-layout / packing (tiny; would be pre-packed once in serving) ---
    # out[b,t,o] = sum_{k,c} patch[b,t,(k,c)] * W[o,c,k]  ->  wc[(k,c), o]
    wc = jnp.transpose(params["conv_w"], (2, 1, 0)).reshape(
        KERNEL_SIZE * EMBED_DIM, OUT_CHANNELS).astype(jnp.bfloat16)
    w1 = params["lin1_w"].T.astype(jnp.bfloat16)               # (C, UNITS)
    w2 = params["lin2_w"].astype(jnp.float32)                  # (1, UNITS) row
    biases = jnp.zeros((3, UNITS), jnp.float32)
    biases = biases.at[0, :OUT_CHANNELS].set(params["conv_b"])
    biases = biases.at[1, :].set(params["lin1_b"])
    biases = biases.at[2, 0].set(params["lin2_b"][0])

    kernel = functools.partial(cnn_kernel, tb=tb, seq_len=L, l_out=l_out)

    grid_spec = pltpu.PrefetchScalarGridSpec(
        num_scalar_prefetch=1,                 # tokens -> SMEM, readable as scalars
        grid=(g,),                             # batch tiles
        in_specs=[
            # All weights: full-array blocks with constant index_maps -> fetched
            # once, resident in VMEM across every grid step.
            pl.BlockSpec((NUM_EMBEDDINGS, EMBED_DIM), lambda i, tok: (0, 0)),
            pl.BlockSpec((KERNEL_SIZE * EMBED_DIM, OUT_CHANNELS),
                         lambda i, tok: (0, 0)),
            pl.BlockSpec((OUT_CHANNELS, UNITS), lambda i, tok: (0, 0)),
            pl.BlockSpec((1, UNITS), lambda i, tok: (0, 0)),
            pl.BlockSpec((3, UNITS), lambda i, tok: (0, 0)),
        ],
        out_specs=pl.BlockSpec((tb, 1), lambda i, tok: (i, 0)),
    )

    out = pl.pallas_call(
        kernel,
        out_shape=jax.ShapeDtypeStruct((b_pad, 1), jnp.float32),
        grid_spec=grid_spec,
        compiler_params=pltpu.CompilerParams(
            dimension_semantics=("parallel",)),   # shard batch tiles across TCs (v7x)
    )(tokens, params["embedding"], wc, w1, w2, biases)
    return out[:B]


def reference_forward(tokens, params):
    """Pure-JAX f32 reference replicating the PyTorch forward (eval mode)."""
    emb = jnp.take(params["embedding"], tokens, axis=0)          # (B, L, E)
    x = jnp.transpose(emb, (0, 2, 1))                            # (B, E, L) NCW
    conv = jax.lax.conv_general_dilated(
        x, params["conv_w"], window_strides=(STRIDE,), padding="VALID",
        dimension_numbers=("NCH", "OIH", "NCH"),
    ) + params["conv_b"][None, :, None]
    conv = jax.nn.relu(conv)                                     # (B, C, L_out)
    pooled = jnp.max(conv, axis=2)                               # (B, C)
    h = jax.nn.relu(pooled @ params["lin1_w"].T + params["lin1_b"])
    return jax.nn.sigmoid(h @ params["lin2_w"].T + params["lin2_b"])


if __name__ == "__main__":
    key = jax.random.PRNGKey(0)
    k_param, k_tok = jax.random.split(key)

    params = init_params(k_param)

    B, L = 2, 16
    tokens = jax.random.randint(k_tok, (B, L), 0, NUM_EMBEDDINGS,
                                dtype=jnp.int32)

    out = cnn_forward(tokens, params)
    out = jax.block_until_ready(out)

    ref = jax.block_until_ready(reference_forward(tokens, params))
    assert out.shape == (B, 1)
    # Tolerance accounts for bf16 MXU operands (f32 accumulation) vs the f32 reference.
    assert jnp.allclose(out, ref, atol=1e-2, rtol=1e-2), (out, ref)

    print("KERNEL_OK")
</pallas_src>

<mosaic_0001>
module attributes {stable_mosaic.version = 11 : i64} {
  func.func @cnn_kernel(%arg0: i32, %arg1: memref<2x16xi32, #tpu.memory_space<smem>>, %arg2: memref<6000x16xf32, #tpu.memory_space<vmem>>, %arg3: memref<48x64xbf16, #tpu.memory_space<vmem>>, %arg4: memref<64x256xbf16, #tpu.memory_space<vmem>>, %arg5: memref<1x256xf32, #tpu.memory_space<vmem>>, %arg6: memref<3x256xf32, #tpu.memory_space<vmem>>, %arg7: memref<2x1xf32, #tpu.memory_space<vmem>>) attributes {dimension_semantics = [#tpu.dimension_semantics<parallel>], iteration_bounds = array<i64: 1>, scalar_prefetch = 1 : i64, scratch_operands = 0 : i64, tpu.core_type = #tpu.core_type<tc>, window_params = [{pipeline_mode = #tpu.pipeline_mode<synchronous>, transform_indices = @transform_0, window_bounds = array<i64: 6000, 16>}, {pipeline_mode = #tpu.pipeline_mode<synchronous>, transform_indices = @transform_1, window_bounds = array<i64: 48, 64>}, {pipeline_mode = #tpu.pipeline_mode<synchronous>, transform_indices = @transform_2, window_bounds = array<i64: 64, 256>}, {pipeline_mode = #tpu.pipeline_mode<synchronous>, transform_indices = @transform_3, window_bounds = array<i64: 1, 256>}, {pipeline_mode = #tpu.pipeline_mode<synchronous>, transform_indices = @transform_4, window_bounds = array<i64: 3, 256>}, {transform_indices = @transform_5, window_bounds = array<i64: 2, 1>}]} {
    %c2_i32 = arith.constant 2 : i32
    %0 = arith.muli %arg0, %c2_i32 : i32
    %c0_i32 = arith.constant 0 : i32
    %1 = arith.addi %0, %c0_i32 : i32
    %2 = arith.index_cast %1 : i32 to index
    %c0 = arith.constant 0 : index
    %3 = memref.load %arg1[%2, %c0] : memref<2x16xi32, #tpu.memory_space<smem>>
    %4 = arith.index_cast %3 : i32 to index
    %c0_0 = arith.constant 0 : index
    %5 = vector.load %arg2[%4, %c0_0] : memref<6000x16xf32, #tpu.memory_space<vmem>>, vector<1x16xf32>
    %c2_i32_1 = arith.constant 2 : i32
    %6 = arith.muli %arg0, %c2_i32_1 : i32
    %c0_i32_2 = arith.constant 0 : i32
    %7 = arith.addi %6, %c0_i32_2 : i32
    %8 = arith.index_cast %7 : i32 to index
    %c1 = arith.constant 1 : index
    %9 = memref.load %arg1[%8, %c1] : memref<2x16xi32, #tpu.memory_space<smem>>
    %10 = arith.index_cast %9 : i32 to index
    %c0_3 = arith.constant 0 : index
    %11 = vector.load %arg2[%10, %c0_3] : memref<6000x16xf32, #tpu.memory_space<vmem>>, vector<1x16xf32>
    %c2_i32_4 = arith.constant 2 : i32
    %12 = arith.muli %arg0, %c2_i32_4 : i32
    %c0_i32_5 = arith.constant 0 : i32
    %13 = arith.addi %12, %c0_i32_5 : i32
    %14 = arith.index_cast %13 : i32 to index
    %c2 = arith.constant 2 : index
    %15 = memref.load %arg1[%14, %c2] : memref<2x16xi32, #tpu.memory_space<smem>>
    %16 = arith.index_cast %15 : i32 to index
    %c0_6 = arith.constant 0 : index
    %17 = vector.load %arg2[%16, %c0_6] : memref<6000x16xf32, #tpu.memory_space<vmem>>, vector<1x16xf32>
    %c2_i32_7 = arith.constant 2 : i32
    %18 = arith.muli %arg0, %c2_i32_7 : i32
    %c0_i32_8 = arith.constant 0 : i32
    %19 = arith.addi %18, %c0_i32_8 : i32
    %20 = arith.index_cast %19 : i32 to index
    %c3 = arith.constant 3 : index
    %21 = memref.load %arg1[%20, %c3] : memref<2x16xi32, #tpu.memory_space<smem>>
    %22 = arith.index_cast %21 : i32 to index
    %c0_9 = arith.constant 0 : index
    %23 = vector.load %arg2[%22, %c0_9] : memref<6000x16xf32, #tpu.memory_space<vmem>>, vector<1x16xf32>
    %c2_i32_10 = arith.constant 2 : i32
    %24 = arith.muli %arg0, %c2_i32_10 : i32
    %c0_i32_11 = arith.constant 0 : i32
    %25 = arith.addi %24, %c0_i32_11 : i32
    %26 = arith.index_cast %25 : i32 to index
    %c4 = arith.constant 4 : index
    %27 = memref.load %arg1[%26, %c4] : memref<2x16xi32, #tpu.memory_space<smem>>
    %28 = arith.index_cast %27 : i32 to index
    %c0_12 = arith.constant 0 : index
    %29 = vector.load %arg2[%28, %c0_12] : memref<6000x16xf32, #tpu.memory_space<vmem>>, vector<1x16xf32>
    %c2_i32_13 = arith.constant 2 : i32
    %30 = arith.muli %arg0, %c2_i32_13 : i32
    %c0_i32_14 = arith.constant 0 : i32
    %31 = arith.addi %30, %c0_i32_14 : i32
    %32 = arith.index_cast %31 : i32 to index
    %c5 = arith.constant 5 : index
    %33 = memref.load %arg1[%32, %c5] : memref<2x16xi32, #tpu.memory_space<smem>>
    %34 = arith.index_cast %33 : i32 to index
    %c0_15 = arith.constant 0 : index
    %35 = vector.load %arg2[%34, %c0_15] : memref<6000x16xf32, #tpu.memory_space<vmem>>, vector<1x16xf32>
    %c2_i32_16 = arith.constant 2 : i32
    %36 = arith.muli %arg0, %c2_i32_16 : i32
    %c0_i32_17 = arith.constant 0 : i32
    %37 = arith.addi %36, %c0_i32_17 : i32
    %38 = arith.index_cast %37 : i32 to index
    %c6 = arith.constant 6 : index
    %39 = memref.load %arg1[%38, %c6] : memref<2x16xi32, #tpu.memory_space<smem>>
    %40 = arith.index_cast %39 : i32 to index
    %c0_18 = arith.constant 0 : index
    %41 = vector.load %arg2[%40, %c0_18] : memref<6000x16xf32, #tpu.memory_space<vmem>>, vector<1x16xf32>
    %c2_i32_19 = arith.constant 2 : i32
    %42 = arith.muli %arg0, %c2_i32_19 : i32
    %c0_i32_20 = arith.constant 0 : i32
    %43 = arith.addi %42, %c0_i32_20 : i32
    %44 = arith.index_cast %43 : i32 to index
    %c7 = arith.constant 7 : index
    %45 = memref.load %arg1[%44, %c7] : memref<2x16xi32, #tpu.memory_space<smem>>
    %46 = arith.index_cast %45 : i32 to index
    %c0_21 = arith.constant 0 : index
    %47 = vector.load %arg2[%46, %c0_21] : memref<6000x16xf32, #tpu.memory_space<vmem>>, vector<1x16xf32>
    %c2_i32_22 = arith.constant 2 : i32
    %48 = arith.muli %arg0, %c2_i32_22 : i32
    %c0_i32_23 = arith.constant 0 : i32
    %49 = arith.addi %48, %c0_i32_23 : i32
    %50 = arith.index_cast %49 : i32 to index
    %c8 = arith.constant 8 : index
    %51 = memref.load %arg1[%50, %c8] : memref<2x16xi32, #tpu.memory_space<smem>>
    %52 = arith.index_cast %51 : i32 to index
    %c0_24 = arith.constant 0 : index
    %53 = vector.load %arg2[%52, %c0_24] : memref<6000x16xf32, #tpu.memory_space<vmem>>, vector<1x16xf32>
    %c2_i32_25 = arith.constant 2 : i32
    %54 = arith.muli %arg0, %c2_i32_25 : i32
    %c0_i32_26 = arith.constant 0 : i32
    %55 = arith.addi %54, %c0_i32_26 : i32
    %56 = arith.index_cast %55 : i32 to index
    %c9 = arith.constant 9 : index
    %57 = memref.load %arg1[%56, %c9] : memref<2x16xi32, #tpu.memory_space<smem>>
    %58 = arith.index_cast %57 : i32 to index
    %c0_27 = arith.constant 0 : index
    %59 = vector.load %arg2[%58, %c0_27] : memref<6000x16xf32, #tpu.memory_space<vmem>>, vector<1x16xf32>
    %c2_i32_28 = arith.constant 2 : i32
    %60 = arith.muli %arg0, %c2_i32_28 : i32
    %c0_i32_29 = arith.constant 0 : i32
    %61 = arith.addi %60, %c0_i32_29 : i32
    %62 = arith.index_cast %61 : i32 to index
    %c10 = arith.constant 10 : index
    %63 = memref.load %arg1[%62, %c10] : memref<2x16xi32, #tpu.memory_space<smem>>
    %64 = arith.index_cast %63 : i32 to index
    %c0_30 = arith.constant 0 : index
    %65 = vector.load %arg2[%64, %c0_30] : memref<6000x16xf32, #tpu.memory_space<vmem>>, vector<1x16xf32>
    %c2_i32_31 = arith.constant 2 : i32
    %66 = arith.muli %arg0, %c2_i32_31 : i32
    %c0_i32_32 = arith.constant 0 : i32
    %67 = arith.addi %66, %c0_i32_32 : i32
    %68 = arith.index_cast %67 : i32 to index
    %c11 = arith.constant 11 : index
    %69 = memref.load %arg1[%68, %c11] : memref<2x16xi32, #tpu.memory_space<smem>>
    %70 = arith.index_cast %69 : i32 to index
    %c0_33 = arith.constant 0 : index
    %71 = vector.load %arg2[%70, %c0_33] : memref<6000x16xf32, #tpu.memory_space<vmem>>, vector<1x16xf32>
    %c2_i32_34 = arith.constant 2 : i32
    %72 = arith.muli %arg0, %c2_i32_34 : i32
    %c0_i32_35 = arith.constant 0 : i32
    %73 = arith.addi %72, %c0_i32_35 : i32
    %74 = arith.index_cast %73 : i32 to index
    %c12 = arith.constant 12 : index
    %75 = memref.load %arg1[%74, %c12] : memref<2x16xi32, #tpu.memory_space<smem>>
    %76 = arith.index_cast %75 : i32 to index
    %c0_36 = arith.constant 0 : index
    %77 = vector.load %arg2[%76, %c0_36] : memref<6000x16xf32, #tpu.memory_space<vmem>>, vector<1x16xf32>
    %c2_i32_37 = arith.constant 2 : i32
    %78 = arith.muli %arg0, %c2_i32_37 : i32
    %c0_i32_38 = arith.constant 0 : i32
    %79 = arith.addi %78, %c0_i32_38 : i32
    %80 = arith.index_cast %79 : i32 to index
    %c13 = arith.constant 13 : index
    %81 = memref.load %arg1[%80, %c13] : memref<2x16xi32, #tpu.memory_space<smem>>
    %82 = arith.index_cast %81 : i32 to index
    %c0_39 = arith.constant 0 : index
    %83 = vector.load %arg2[%82, %c0_39] : memref<6000x16xf32, #tpu.memory_space<vmem>>, vector<1x16xf32>
    %c2_i32_40 = arith.constant 2 : i32
    %84 = arith.muli %arg0, %c2_i32_40 : i32
    %c0_i32_41 = arith.constant 0 : i32
    %85 = arith.addi %84, %c0_i32_41 : i32
    %86 = arith.index_cast %85 : i32 to index
    %c14 = arith.constant 14 : index
    %87 = memref.load %arg1[%86, %c14] : memref<2x16xi32, #tpu.memory_space<smem>>
    %88 = arith.index_cast %87 : i32 to index
    %c0_42 = arith.constant 0 : index
    %89 = vector.load %arg2[%88, %c0_42] : memref<6000x16xf32, #tpu.memory_space<vmem>>, vector<1x16xf32>
    %c2_i32_43 = arith.constant 2 : i32
    %90 = arith.muli %arg0, %c2_i32_43 : i32
    %c1_i32 = arith.constant 1 : i32
    %91 = arith.addi %90, %c1_i32 : i32
    %92 = arith.index_cast %91 : i32 to index
    %c0_44 = arith.constant 0 : index
    %93 = memref.load %arg1[%92, %c0_44] : memref<2x16xi32, #tpu.memory_space<smem>>
    %94 = arith.index_cast %93 : i32 to index
    %c0_45 = arith.constant 0 : index
    %95 = vector.load %arg2[%94, %c0_45] : memref<6000x16xf32, #tpu.memory_space<vmem>>, vector<1x16xf32>
    %c2_i32_46 = arith.constant 2 : i32
    %96 = arith.muli %arg0, %c2_i32_46 : i32
    %c1_i32_47 = arith.constant 1 : i32
    %97 = arith.addi %96, %c1_i32_47 : i32
    %98 = arith.index_cast %97 : i32 to index
    %c1_48 = arith.constant 1 : index
    %99 = memref.load %arg1[%98, %c1_48] : memref<2x16xi32, #tpu.memory_space<smem>>
    %100 = arith.index_cast %99 : i32 to index
    %c0_49 = arith.constant 0 : index
    %101 = vector.load %arg2[%100, %c0_49] : memref<6000x16xf32, #tpu.memory_space<vmem>>, vector<1x16xf32>
    %c2_i32_50 = arith.constant 2 : i32
    %102 = arith.muli %arg0, %c2_i32_50 : i32
    %c1_i32_51 = arith.constant 1 : i32
    %103 = arith.addi %102, %c1_i32_51 : i32
    %104 = arith.index_cast %103 : i32 to index
    %c2_52 = arith.constant 2 : index
    %105 = memref.load %arg1[%104, %c2_52] : memref<2x16xi32, #tpu.memory_space<smem>>
    %106 = arith.index_cast %105 : i32 to index
    %c0_53 = arith.constant 0 : index
    %107 = vector.load %arg2[%106, %c0_53] : memref<6000x16xf32, #tpu.memory_space<vmem>>, vector<1x16xf32>
    %c2_i32_54 = arith.constant 2 : i32
    %108 = arith.muli %arg0, %c2_i32_54 : i32
    %c1_i32_55 = arith.constant 1 : i32
    %109 = arith.addi %108, %c1_i32_55 : i32
    %110 = arith.index_cast %109 : i32 to index
    %c3_56 = arith.constant 3 : index
    %111 = memref.load %arg1[%110, %c3_56] : memref<2x16xi32, #tpu.memory_space<smem>>
    %112 = arith.index_cast %111 : i32 to index
    %c0_57 = arith.constant 0 : index
    %113 = vector.load %arg2[%112, %c0_57] : memref<6000x16xf32, #tpu.memory_space<vmem>>, vector<1x16xf32>
    %c2_i32_58 = arith.constant 2 : i32
    %114 = arith.muli %arg0, %c2_i32_58 : i32
    %c1_i32_59 = arith.constant 1 : i32
    %115 = arith.addi %114, %c1_i32_59 : i32
    %116 = arith.index_cast %115 : i32 to index
    %c4_60 = arith.constant 4 : index
    %117 = memref.load %arg1[%116, %c4_60] : memref<2x16xi32, #tpu.memory_space<smem>>
    %118 = arith.index_cast %117 : i32 to index
    %c0_61 = arith.constant 0 : index
    %119 = vector.load %arg2[%118, %c0_61] : memref<6000x16xf32, #tpu.memory_space<vmem>>, vector<1x16xf32>
    %c2_i32_62 = arith.constant 2 : i32
    %120 = arith.muli %arg0, %c2_i32_62 : i32
    %c1_i32_63 = arith.constant 1 : i32
    %121 = arith.addi %120, %c1_i32_63 : i32
    %122 = arith.index_cast %121 : i32 to index
    %c5_64 = arith.constant 5 : index
    %123 = memref.load %arg1[%122, %c5_64] : memref<2x16xi32, #tpu.memory_space<smem>>
    %124 = arith.index_cast %123 : i32 to index
    %c0_65 = arith.constant 0 : index
    %125 = vector.load %arg2[%124, %c0_65] : memref<6000x16xf32, #tpu.memory_space<vmem>>, vector<1x16xf32>
    %c2_i32_66 = arith.constant 2 : i32
    %126 = arith.muli %arg0, %c2_i32_66 : i32
    %c1_i32_67 = arith.constant 1 : i32
    %127 = arith.addi %126, %c1_i32_67 : i32
    %128 = arith.index_cast %127 : i32 to index
    %c6_68 = arith.constant 6 : index
    %129 = memref.load %arg1[%128, %c6_68] : memref<2x16xi32, #tpu.memory_space<smem>>
    %130 = arith.index_cast %129 : i32 to index
    %c0_69 = arith.constant 0 : index
    %131 = vector.load %arg2[%130, %c0_69] : memref<6000x16xf32, #tpu.memory_space<vmem>>, vector<1x16xf32>
    %c2_i32_70 = arith.constant 2 : i32
    %132 = arith.muli %arg0, %c2_i32_70 : i32
    %c1_i32_71 = arith.constant 1 : i32
    %133 = arith.addi %132, %c1_i32_71 : i32
    %134 = arith.index_cast %133 : i32 to index
    %c7_72 = arith.constant 7 : index
    %135 = memref.load %arg1[%134, %c7_72] : memref<2x16xi32, #tpu.memory_space<smem>>
    %136 = arith.index_cast %135 : i32 to index
    %c0_73 = arith.constant 0 : index
    %137 = vector.load %arg2[%136, %c0_73] : memref<6000x16xf32, #tpu.memory_space<vmem>>, vector<1x16xf32>
    %c2_i32_74 = arith.constant 2 : i32
    %138 = arith.muli %arg0, %c2_i32_74 : i32
    %c1_i32_75 = arith.constant 1 : i32
    %139 = arith.addi %138, %c1_i32_75 : i32
    %140 = arith.index_cast %139 : i32 to index
    %c8_76 = arith.constant 8 : index
    %141 = memref.load %arg1[%140, %c8_76] : memref<2x16xi32, #tpu.memory_space<smem>>
    %142 = arith.index_cast %141 : i32 to index
    %c0_77 = arith.constant 0 : index
    %143 = vector.load %arg2[%142, %c0_77] : memref<6000x16xf32, #tpu.memory_space<vmem>>, vector<1x16xf32>
    %c2_i32_78 = arith.constant 2 : i32
    %144 = arith.muli %arg0, %c2_i32_78 : i32
    %c1_i32_79 = arith.constant 1 : i32
    %145 = arith.addi %144, %c1_i32_79 : i32
    %146 = arith.index_cast %145 : i32 to index
    %c9_80 = arith.constant 9 : index
    %147 = memref.load %arg1[%146, %c9_80] : memref<2x16xi32, #tpu.memory_space<smem>>
    %148 = arith.index_cast %147 : i32 to index
    %c0_81 = arith.constant 0 : index
    %149 = vector.load %arg2[%148, %c0_81] : memref<6000x16xf32, #tpu.memory_space<vmem>>, vector<1x16xf32>
    %c2_i32_82 = arith.constant 2 : i32
    %150 = arith.muli %arg0, %c2_i32_82 : i32
    %c1_i32_83 = arith.constant 1 : i32
    %151 = arith.addi %150, %c1_i32_83 : i32
    %152 = arith.index_cast %151 : i32 to index
    %c10_84 = arith.constant 10 : index
    %153 = memref.load %arg1[%152, %c10_84] : memref<2x16xi32, #tpu.memory_space<smem>>
    %154 = arith.index_cast %153 : i32 to index
    %c0_85 = arith.constant 0 : index
    %155 = vector.load %arg2[%154, %c0_85] : memref<6000x16xf32, #tpu.memory_space<vmem>>, vector<1x16xf32>
    %c2_i32_86 = arith.constant 2 : i32
    %156 = arith.muli %arg0, %c2_i32_86 : i32
    %c1_i32_87 = arith.constant 1 : i32
    %157 = arith.addi %156, %c1_i32_87 : i32
    %158 = arith.index_cast %157 : i32 to index
    %c11_88 = arith.constant 11 : index
    %159 = memref.load %arg1[%158, %c11_88] : memref<2x16xi32, #tpu.memory_space<smem>>
    %160 = arith.index_cast %159 : i32 to index
    %c0_89 = arith.constant 0 : index
    %161 = vector.load %arg2[%160, %c0_89] : memref<6000x16xf32, #tpu.memory_space<vmem>>, vector<1x16xf32>
    %c2_i32_90 = arith.constant 2 : i32
    %162 = arith.muli %arg0, %c2_i32_90 : i32
    %c1_i32_91 = arith.constant 1 : i32
    %163 = arith.addi %162, %c1_i32_91 : i32
    %164 = arith.index_cast %163 : i32 to index
    %c12_92 = arith.constant 12 : index
    %165 = memref.load %arg1[%164, %c12_92] : memref<2x16xi32, #tpu.memory_space<smem>>
    %166 = arith.index_cast %165 : i32 to index
    %c0_93 = arith.constant 0 : index
    %167 = vector.load %arg2[%166, %c0_93] : memref<6000x16xf32, #tpu.memory_space<vmem>>, vector<1x16xf32>
    %c2_i32_94 = arith.constant 2 : i32
    %168 = arith.muli %arg0, %c2_i32_94 : i32
    %c1_i32_95 = arith.constant 1 : i32
    %169 = arith.addi %168, %c1_i32_95 : i32
    %170 = arith.index_cast %169 : i32 to index
    %c13_96 = arith.constant 13 : index
    %171 = memref.load %arg1[%170, %c13_96] : memref<2x16xi32, #tpu.memory_space<smem>>
    %172 = arith.index_cast %171 : i32 to index
    %c0_97 = arith.constant 0 : index
    %173 = vector.load %arg2[%172, %c0_97] : memref<6000x16xf32, #tpu.memory_space<vmem>>, vector<1x16xf32>
    %c2_i32_98 = arith.constant 2 : i32
    %174 = arith.muli %arg0, %c2_i32_98 : i32
    %c1_i32_99 = arith.constant 1 : i32
    %175 = arith.addi %174, %c1_i32_99 : i32
    %176 = arith.index_cast %175 : i32 to index
    %c14_100 = arith.constant 14 : index
    %177 = memref.load %arg1[%176, %c14_100] : memref<2x16xi32, #tpu.memory_space<smem>>
    %178 = arith.index_cast %177 : i32 to index
    %c0_101 = arith.constant 0 : index
    %179 = vector.load %arg2[%178, %c0_101] : memref<6000x16xf32, #tpu.memory_space<vmem>>, vector<1x16xf32>
    %180 = tpu.concatenate %5, %11, %17 in 1 : vector<1x16xf32>, vector<1x16xf32>, vector<1x16xf32> -> vector<1x48xf32>
    %181 = tpu.concatenate %17, %23, %29 in 1 : vector<1x16xf32>, vector<1x16xf32>, vector<1x16xf32> -> vector<1x48xf32>
    %182 = tpu.concatenate %29, %35, %41 in 1 : vector<1x16xf32>, vector<1x16xf32>, vector<1x16xf32> -> vector<1x48xf32>
    %183 = tpu.concatenate %41, %47, %53 in 1 : vector<1x16xf32>, vector<1x16xf32>, vector<1x16xf32> -> vector<1x48xf32>
    %184 = tpu.concatenate %53, %59, %65 in 1 : vector<1x16xf32>, vector<1x16xf32>, vector<1x16xf32> -> vector<1x48xf32>
    %185 = tpu.concatenate %65, %71, %77 in 1 : vector<1x16xf32>, vector<1x16xf32>, vector<1x16xf32> -> vector<1x48xf32>
    %186 = tpu.concatenate %77, %83, %89 in 1 : vector<1x16xf32>, vector<1x16xf32>, vector<1x16xf32> -> vector<1x48xf32>
    %187 = tpu.concatenate %95, %101, %107 in 1 : vector<1x16xf32>, vector<1x16xf32>, vector<1x16xf32> -> vector<1x48xf32>
    %188 = tpu.concatenate %107, %113, %119 in 1 : vector<1x16xf32>, vector<1x16xf32>, vector<1x16xf32> -> vector<1x48xf32>
    %189 = tpu.concatenate %119, %125, %131 in 1 : vector<1x16xf32>, vector<1x16xf32>, vector<1x16xf32> -> vector<1x48xf32>
    %190 = tpu.concatenate %131, %137, %143 in 1 : vector<1x16xf32>, vector<1x16xf32>, vector<1x16xf32> -> vector<1x48xf32>
    %191 = tpu.concatenate %143, %149, %155 in 1 : vector<1x16xf32>, vector<1x16xf32>, vector<1x16xf32> -> vector<1x48xf32>
    %192 = tpu.concatenate %155, %161, %167 in 1 : vector<1x16xf32>, vector<1x16xf32>, vector<1x16xf32> -> vector<1x48xf32>
    %193 = tpu.concatenate %167, %173, %179 in 1 : vector<1x16xf32>, vector<1x16xf32>, vector<1x16xf32> -> vector<1x48xf32>
    %194 = tpu.concatenate %180, %181, %182, %183, %184, %185, %186, %187, %188, %189, %190, %191, %192, %193 in 0 : vector<1x48xf32>, vector<1x48xf32>, vector<1x48xf32>, vector<1x48xf32>, vector<1x48xf32>, vector<1x48xf32>, vector<1x48xf32>, vector<1x48xf32>, vector<1x48xf32>, vector<1x48xf32>, vector<1x48xf32>, vector<1x48xf32>, vector<1x48xf32>, vector<1x48xf32> -> vector<14x48xf32>
    %195 = arith.truncf %194 : vector<14x48xf32> to vector<14x48xbf16>
    %c0_102 = arith.constant 0 : index
    %c0_103 = arith.constant 0 : index
    %196 = vector.load %arg3[%c0_102, %c0_103] : memref<48x64xbf16, #tpu.memory_space<vmem>>, vector<48x64xbf16>
    %cst = arith.constant dense<0.000000e+00> : vector<14x64xf32>
    %197 = tpu.matmul %195, %196, %cst {dimension_numbers = #tpu.dot_dimension_numbers<[1], [0], [0], [1], [0, 0, 1, 1], [], []>} : vector<14x48xbf16>, vector<48x64xbf16>, vector<14x64xf32> -> vector<14x64xf32>
    %c0_104 = arith.constant 0 : index
    %c0_105 = arith.constant 0 : index
    %198 = vector.load %arg6[%c0_104, %c0_105] : memref<3x256xf32, #tpu.memory_space<vmem>>, vector<1x64xf32>
    %199 = vector.broadcast %198 : vector<1x64xf32> to vector<14x64xf32>
    %200 = arith.addf %197, %199 : vector<14x64xf32>
    %cst_106 = arith.constant 0.000000e+00 : f32
    %201 = vector.broadcast %cst_106 : f32 to vector<14x64xf32>
    %202 = arith.maximumf %200, %201 : vector<14x64xf32>
    %203 = vector.extract_strided_slice %202 {offsets = [0, 0], sizes = [7, 64], strides = [1, 1]} : vector<14x64xf32> to vector<7x64xf32>
    %cst_107 = arith.constant dense<0xFF800000> : vector<64xf32>
    %204 = vector.multi_reduction <maximumf>, %203, %cst_107 [0] : vector<7x64xf32> to vector<64xf32>
    %205 = vector.shape_cast %204 : vector<64xf32> to vector<1x64xf32>
    %206 = vector.extract_strided_slice %202 {offsets = [7, 0], sizes = [7, 64], strides = [1, 1]} : vector<14x64xf32> to vector<7x64xf32>
    %cst_108 = arith.constant dense<0xFF800000> : vector<64xf32>
    %207 = vector.multi_reduction <maximumf>, %206, %cst_108 [0] : vector<7x64xf32> to vector<64xf32>
    %208 = vector.shape_cast %207 : vector<64xf32> to vector<1x64xf32>
    %209 = tpu.concatenate %205, %208 in 0 : vector<1x64xf32>, vector<1x64xf32> -> vector<2x64xf32>
    %210 = arith.truncf %209 : vector<2x64xf32> to vector<2x64xbf16>
    %c0_109 = arith.constant 0 : index
    %c0_110 = arith.constant 0 : index
    %211 = vector.load %arg4[%c0_109, %c0_110] : memref<64x256xbf16, #tpu.memory_space<vmem>>, vector<64x256xbf16>
    %cst_111 = arith.constant dense<0.000000e+00> : vector<2x256xf32>
    %212 = tpu.matmul %210, %211, %cst_111 {dimension_numbers = #tpu.dot_dimension_numbers<[1], [0], [0], [1], [0, 0, 1, 1], [], []>} : vector<2x64xbf16>, vector<64x256xbf16>, vector<2x256xf32> -> vector<2x256xf32>
    %c1_112 = arith.constant 1 : index
    %c0_113 = arith.constant 0 : index
    %213 = vector.load %arg6[%c1_112, %c0_113] : memref<3x256xf32, #tpu.memory_space<vmem>>, vector<1x256xf32>
    %214 = vector.broadcast %213 : vector<1x256xf32> to vector<2x256xf32>
    %215 = arith.addf %212, %214 : vector<2x256xf32>
    %cst_114 = arith.constant 0.000000e+00 : f32
    %216 = vector.broadcast %cst_114 : f32 to vector<2x256xf32>
    %217 = arith.maximumf %215, %216 : vector<2x256xf32>
    %c0_115 = arith.constant 0 : index
    %c0_116 = arith.constant 0 : index
    %218 = vector.load %arg5[%c0_115, %c0_116] : memref<1x256xf32, #tpu.memory_space<vmem>>, vector<1x256xf32>
    %219 = vector.broadcast %218 : vector<1x256xf32> to vector<2x256xf32>
    %220 = arith.mulf %217, %219 : vector<2x256xf32>
    %cst_117 = arith.constant dense<0.000000e+00> : vector<2xf32>
    %221 = vector.multi_reduction <add>, %220, %cst_117 [1] : vector<2x256xf32> to vector<2xf32>
    %222 = vector.shape_cast %221 : vector<2xf32> to vector<2x1xf32>
    %c2_118 = arith.constant 2 : index
    %c0_119 = arith.constant 0 : index
    %223 = vector.load %arg6[%c2_118, %c0_119] : memref<3x256xf32, #tpu.memory_space<vmem>>, vector<1x1xf32>
    %224 = vector.broadcast %223 : vector<1x1xf32> to vector<2x1xf32>
    %225 = arith.addf %222, %224 : vector<2x1xf32>
    %226 = arith.negf %225 : vector<2x1xf32>
    %227 = math.exp %226 : vector<2x1xf32>
    %cst_120 = arith.constant 1.000000e+00 : f32
    %228 = vector.broadcast %cst_120 : f32 to vector<2x1xf32>
    %229 = arith.addf %228, %227 : vector<2x1xf32>
    %230 = arith.divf %228, %229 : vector<2x1xf32>
    %c0_121 = arith.constant 0 : index
    %c0_122 = arith.constant 0 : index
    %231 = vector.load %arg7[%c0_121, %c0_122] : memref<2x1xf32, #tpu.memory_space<vmem>>, vector<2x1xf32>
    tpu.vector_store %arg7[%c0_121, %c0_122], %230 {strides = array<i32>} : memref<2x1xf32, #tpu.memory_space<vmem>>, vector<2x1xf32>,
    return
  }
  func.func @transform_0(%arg0: i32, %arg1: memref<2x16xi32, #tpu.memory_space<smem>>) -> (i32, i32) {
    %c0_i32 = arith.constant 0 : i32
    %c0_i32_0 = arith.constant 0 : i32
    %c0_i32_1 = arith.constant 0 : i32
    return %c0_i32, %c0_i32_0 : i32, i32
  }
  func.func @transform_1(%arg0: i32, %arg1: memref<2x16xi32, #tpu.memory_space<smem>>) -> (i32, i32) {
    %c0_i32 = arith.constant 0 : i32
    %c0_i32_0 = arith.constant 0 : i32
    %c0_i32_1 = arith.constant 0 : i32
    return %c0_i32, %c0_i32_0 : i32, i32
  }
  func.func @transform_2(%arg0: i32, %arg1: memref<2x16xi32, #tpu.memory_space<smem>>) -> (i32, i32) {
    %c0_i32 = arith.constant 0 : i32
    %c0_i32_0 = arith.constant 0 : i32
    %c0_i32_1 = arith.constant 0 : i32
    return %c0_i32, %c0_i32_0 : i32, i32
  }
  func.func @transform_3(%arg0: i32, %arg1: memref<2x16xi32, #tpu.memory_space<smem>>) -> (i32, i32) {
    %c0_i32 = arith.constant 0 : i32
    %c0_i32_0 = arith.constant 0 : i32
    %c0_i32_1 = arith.constant 0 : i32
    return %c0_i32, %c0_i32_0 : i32, i32
  }
  func.func @transform_4(%arg0: i32, %arg1: memref<2x16xi32, #tpu.memory_space<smem>>) -> (i32, i32) {
    %c0_i32 = arith.constant 0 : i32
    %c0_i32_0 = arith.constant 0 : i32
    %c0_i32_1 = arith.constant 0 : i32
    return %c0_i32, %c0_i32_0 : i32, i32
  }
  func.func @transform_5(%arg0: i32, %arg1: memref<2x16xi32, #tpu.memory_space<smem>>) -> (i32, i32) {
    %c0_i32 = arith.constant 0 : i32
    %c0_i32_0 = arith.constant 0 : i32
    return %arg0, %c0_i32 : i32, i32
  }
}

</mosaic_0001>

<bundles_post_ra>
// kernel: tpu_custom_call.1
= control target key start
LH: loop header
LB: loop body
LE: loop exit
PB: predicated region body
PF: predicated region fallthrough
CT: control target
= control target key end

     0   :  { %s757_s24 = smov [#allocation3]   ;;  %s1117_s0 = inlined_call_operand.vmem [shape: s32[2,16], index: 0, kind: input, shape index: {}]   ;;  %s1118_s1 = inlined_call_operand.vmem [shape: f32[6000,16], index: 1, kind: input, shape index: {}]   ;;  %s1119_s2 = inlined_call_operand.vmem [shape: bf16[48,64], index: 2, kind: input, shape index: {}]   ;;  %s1120_s3 = inlined_call_operand.vmem [shape: bf16[64,256], index: 3, kind: input, shape index: {}]   ;;  %s1121_s4 = inlined_call_operand.vmem [shape: f32[1,256], index: 4, kind: input, shape index: {}]   ;;  %s1122_s5 = inlined_call_operand.vmem [shape: f32[3,256], index: 5, kind: input, shape index: {}]   ;;  %s1123_s6 = inlined_call_operand.vmem [shape: f32[2,1], index: 6, kind: output, shape index: {}]  }
   0x1   :  { %s12_s23 = sshll.u32 %s1117_s0, 4  ;;  %s13_s23 = int_to_ptr.vmem [resolvable:$true] %s12_s23 }
   0x2   :  { %15 = dma.vmem_to_smem %s13_s23, 32, %s757_s24, [#allocation2] }
   0x3   :  { %755 = dma.done.wait [#allocation2], 32 }
   0x4   :  { %756 = vsyncadd [#allocation2], 4294967264 }
   0x5   :  { %18 = sfence }
   0x6   :  { %s577_s25 = sld [smem:[#allocation3 + $0x3]]  ;;  %v655_v43 = vld [vmem:[%s1119_s2 + $0x10] sm:$0xff]  ;;  %v654_v47 = vld [vmem:[%s1119_s2 + $0x8] sm:$0xff]  ;;  %v653_v48 = vld [vmem:[%s1119_s2] sm:$0xff]  ;;  %vm160_vm0 = vcmask 130048   ;;  %vm162_vm1 = vcmask 261120  }
   0x7   :  { %s579_s26 = sld [smem:[#allocation3 + $0x5]]  ;;  %385 = vmatpush.bf16.msra.mxu0 %v655_v43  ;;  %vm330_vm2 = vcmask 1040384   ;;  %vm332_vm3 = vcmask 1041408   ;;  %vm334_vm4 = vcmask 1042432   ;;  %vm336_vm5 = vcmask 1043456  }
   0x8   :  { %s575_s27 = sld [smem:[#allocation3 + $0x1]]  ;;  %vm338_vm6 = vcmask 1044480   ;;  %vm340_vm7 = vcmask 1045504   ;;  %vm342_vm8 = vcmask 1046528   ;;  %vm376_vm9 = vcmask 392192  }
   0x9   :  { %s581_s28 = sld [smem:[#allocation3 + $0x7]]  ;;  %vm396_vm10 = vcmask 522240   ;;  %vm404_vm11 = vcmask 523271   ;;  %vm406_vm12 = vcmask 521216   ;;  %vm472_vm13 = vcmask 523264  }
   0xa   :  { %s578_s29 = sld [smem:[#allocation3 + $0x4]] }
   0xb   :  { %s580_s30 = sld [smem:[#allocation3 + $0x6]]  ;;  %386 = vmatpush.bf16.msra.mxu0 %v654_v47 }
   0xc   :  { %s45_s9 = scalar_lea.vmem %s1118_s1, %s577_s25  ;;  %s583_s10 = sld [smem:[#allocation3 + $0x9]] }
   0xd   :  { %v46_v0 = vld [vmem:[%s45_s9] sm:$0x1]  ;;  %s53_s12 = scalar_lea.vmem %s1118_s1, %s579_s26  ;;  %s594_s13 = sld [smem:[#allocation3 + $0x85]] }
   0xe   :  { %v54_v1 = vld [vmem:[%s53_s12] sm:$0x1]  ;;  %s37_s16 = scalar_lea.vmem %s1118_s1, %s575_s27  ;;  %s807_s17 = sld [smem:[#allocation3 + $0xb]] }
   0xf   :  { %v667_v2 = vpack.i.bf16 %v54_v1, %v46_v0  ;;  %v38_v3 = vld [vmem:[%s37_s16] sm:$0x1]  ;;  %s61_s20 = scalar_lea.vmem %s1118_s1, %s581_s28  ;;  %s812_s21 = sld [smem:[#allocation3 + $0x87]]  ;;  %387 = vmatpush.bf16.msra.mxu0 %v653_v48 }
  0x10   :  { %v62_v4 = vld [vmem:[%s61_s20] sm:$0x1]  ;;  %s49_s24 = scalar_lea.vmem %s1118_s1, %s578_s29  ;;  %s817_s25 = sld [smem:[#allocation3 + $0x83]] }
  0x11   :  { %s758_s26 = smov 16   ;;  %v677_v5 = vpack.i.bf16 %v62_v4, %v38_v3  ;;  %s57_s8 = scalar_lea.vmem %s1118_s1, %s580_s30  ;;  %v825_v6 = vld [vmem:[%s49_s24] sm:$0x1] }
  0x12   :  { %668 = vrot.lane.b32.xlu0 %v667_v2, %s758_s26  ;;  %s823_s9 = sld [smem:[#allocation3 + $0x89]]  ;;  %v827_v7 = vld [vmem:[%s57_s8] sm:$0x1]  ;;  %s69_s11 = scalar_lea.vmem %s1118_s1, %s583_s10 }
  0x13   :  { %s832_s0 = sld [smem:[#allocation3 + $0xd]]  ;;  %678 = vrot.lane.b32.xlu1 %v677_v5, %s758_s26  ;;  %s114_s30 = scalar_lea.vmem %s1118_s1, %s594_s13  ;;  %v70_v8 = vld [vmem:[%s69_s11] sm:$0x1]  ;;  %v672_v10 = vpack.i.bf16 %v827_v7, %v825_v6 }
  0x14   :  { %s838_s15 = sld [smem:[#allocation3 + $0x8b]]  ;;  %v115_v9 = vld [vmem:[%s114_s30] sm:$0x1]  ;;  %s77_s20 = scalar_lea.vmem %s1118_s1, %s807_s17 }
  0x15   :  { %s840_s16 = sld [smem:[#allocation3 + $0x84]]  ;;  %v682_v11 = vpack.i.bf16 %v70_v8, %v115_v9  ;;  %s122_s24 = scalar_lea.vmem %s1118_s1, %s812_s21  ;;  %v78_v12 = vld [vmem:[%s77_s20] sm:$0x1] }
  0x16   :  { %s844_s10 = sld [smem:[#allocation3 + $0x8a]]  ;;  %s106_s28 = scalar_lea.vmem %s1118_s1, %s817_s25  ;;  %v123_v13 = vld [vmem:[%s122_s24] sm:$0x1] }
  0x17   :  { %s576_s22 = sld [smem:[#allocation3 + $0x2]]  ;;  %s759_s29 = smov 32   ;;  %v107_v14 = vld [vmem:[%s106_s28] sm:$0x1]  ;;  %v697_v16 = vpack.i.bf16 %v78_v12, %v123_v13 }
  0x18   :  { %s582_s27 = sld [smem:[#allocation3 + $0x8]]  ;;  %s130_s14 = scalar_lea.vmem %s1118_s1, %s823_s9 }
  0x19   :  { %s863_s17 = sld [smem:[#allocation3 + $0x81]]  ;;  %s85_s25 = scalar_lea.vmem %s1118_s1, %s832_s0  ;;  %v131_v15 = vld [vmem:[%s130_s14] sm:$0x1] }
  0x1a   :  { %673 = vrot.lane.b32.xlu0 %v672_v10, %s759_s29  ;;  %s584_s30 = sld [smem:[#allocation3 + $0xa]]  ;;  %s138_s9 = scalar_lea.vmem %s1118_s1, %s838_s15  ;;  %v702_v19 = vpack.i.bf16 %v131_v15, %v107_v14  ;;  %v86_v21 = vld [vmem:[%s85_s25] sm:$0x1] }
  0x1b   :  { %683 = vrot.lane.b32.xlu1 %v682_v11, %s758_s26  ;;  %s595_s19 = sld [smem:[#allocation3 + $0x86]]  ;;  %s110_s14 = scalar_lea.vmem %s1118_s1, %s840_s16  ;;  %v139_v22 = vld [vmem:[%s138_s9] sm:$0x1] }
  0x1c   :  { %s882_s21 = sld [smem:[#allocation3 + $0x8d]]  ;;  %s134_s23 = scalar_lea.vmem %s1118_s1, %s844_s10  ;;  %v915_v25 = vld [vmem:[%s110_s14] sm:$0x1]  ;;  %v712_v27 = vpack.i.bf16 %v139_v22, %v86_v21 }
  0x1d   :  { %s41_s20 = scalar_lea.vmem %s1118_s1, %s576_s22  ;;  %s890_s15 = sld [smem:[#allocation3 + $0xc]]  ;;  %v917_v26 = vld [vmem:[%s134_s23] sm:$0x1] }
  0x1e   :  { %v877_v17 = vld [vmem:[%s41_s20] sm:$0x1]  ;;  %s65_s12 = scalar_lea.vmem %s1118_s1, %s582_s27  ;;  %s898_s27 = sld [smem:[#allocation3 + $0x88]]  ;;  %v717_v29 = vpack.i.bf16 %v917_v26, %v915_v25 }
  0x1f   :  { %v888_v18 = vld [vmem:[%s65_s12] sm:$0x1]  ;;  %s903_s16 = sld [smem:[#allocation3 + $0x82]]  ;;  %s98_s12 = scalar_lea.vmem %s1118_s1, %s863_s17 }
  0x20   :  { %v687_v20 = vpack.i.bf16 %v888_v18, %v877_v17  ;;  %s73_s8 = scalar_lea.vmem %s1118_s1, %s584_s30  ;;  %s603_s11 = sld [smem:[#allocation3 + $0x8e]]  ;;  %v99_v30 = vld [vmem:[%s98_s12] sm:$0x1] }
  0x21   :  { %s118_s24 = scalar_lea.vmem %s1118_s1, %s595_s19  ;;  %v910_v23 = vld [vmem:[%s73_s8] sm:$0x1]  ;;  %s588_s19 = sld [smem:[#allocation3 + $0xe]] }
  0x22   :  { %698 = vrot.lane.b32.xlu0 %v697_v16, %s758_s26  ;;  %688 = vrot.lane.b32.xlu2 %v687_v20, %s759_s29  ;;  %v912_v24 = vld [vmem:[%s118_s24] sm:$0x1]  ;;  %s146_s28 = scalar_lea.vmem %s1118_s1, %s882_s21  ;;  %s601_s18 = sld [smem:[#allocation3 + $0x8c]] }
  0x23   :  { %703 = vrot.lane.b32.xlu1 %v702_v19, %s758_s26  ;;  %v692_v28 = vpack.i.bf16 %v910_v23, %v912_v24  ;;  %s81_s23 = scalar_lea.vmem %s1118_s1, %s890_s15  ;;  %v147_v31 = vld [vmem:[%s146_s28] sm:$0x1]  ;;  %s32_s28 = sld [smem:[#allocation3]] }
  0x24   :  { %s126_s17 = scalar_lea.vmem %s1118_s1, %s898_s27  ;;  %v948_v32 = vld [vmem:[%s81_s23] sm:$0x1]  ;;  %v727_v36 = vpack.i.bf16 %v147_v31, %v99_v30  ;;  %s1000_s2 = sld [smem:[#allocation3 + $0x80]] }
  0x25   :  { %s102_s21 = scalar_lea.vmem %s1118_s1, %s903_s16  ;;  %v950_v33 = vld [vmem:[%s126_s17] sm:$0x1] }
  0x26   :  { %s150_s30 = scalar_lea.vmem %s1118_s1, %s603_s11  ;;  %v953_v34 = vld [vmem:[%s102_s21] sm:$0x1]  ;;  %v707_v37 = vpack.i.bf16 %v948_v32, %v950_v33 }
  0x27   :  { %v151_v35 = vld [vmem:[%s150_s30] sm:$0x1]  ;;  %s89_s16 = scalar_lea.vmem %s1118_s1, %s588_s19 }
  0x28   :  { %v732_v38 = vpack.i.bf16 %v151_v35, %v953_v34  ;;  %s142_s12 = scalar_lea.vmem %s1118_s1, %s601_s18  ;;  %v90_v39 = vld [vmem:[%s89_s16] sm:$0x1] }
  0x29   :  { %v966_v40 = vld [vmem:[%s142_s12] sm:$0x1]  ;;  %s33_s23 = scalar_lea.vmem %s1118_s1, %s32_s28 }
  0x2a   :  { %713 = vrot.lane.b32.xlu0 %v712_v27, %s758_s26  ;;  %693 = vrot.lane.b32.xlu2 %v692_v28, %s759_s29  ;;  %v722_v41 = vpack.i.bf16 %v966_v40, %v90_v39  ;;  %v34_v58 = vld [vmem:[%s33_s23] sm:$0x1]  ;;  %s94_s17 = scalar_lea.vmem %s1118_s1, %s1000_s2 }
  0x2b   :  { %718 = vrot.lane.b32.xlu1 %v717_v29, %s759_s29 }
  0x32   :  { %728 = vrot.lane.b32.xlu0 %v727_v36, %s758_s26  ;;  %708 = vrot.lane.b32.xlu2 %v707_v37, %s759_s29 }
  0x33   :  { %733 = vrot.lane.b32.xlu1 %v732_v38, %s759_s29 }
  0x3a   :  { %723 = vrot.lane.b32.xlu2 %v722_v41, %s759_s29 }
  0x7c   :  { %v971_v42 = vpop.permute.xlu2 %688 }
  0x7d   :  { %v690_v63 = vunpack.i.l.bf16 %v971_v42  ;;  %v691_v8 = vunpack.i.h.bf16 %v971_v42 }
  0x84   :  { %v669_v44 = vpop.permute.xlu0 %668  ;;  %v976_v46 = vpop.permute.xlu2 %693 }
  0x85   :  { %v679_v45 = vpop.permute.xlu1 %678  ;;  %v670_v52 = vunpack.i.l.bf16 %v669_v44  ;;  %v671_v57 = vunpack.i.h.bf16 %v669_v44  ;;  %v695_v1 = vunpack.i.l.bf16 %v976_v46  ;;  %v696_v13 = vunpack.i.h.bf16 %v976_v46 }
  0x86   :  { %v680_v54 = vunpack.i.l.bf16 %v679_v45  ;;  %v681_v60 = vunpack.i.h.bf16 %v679_v45 }
  0x87   :  { %v172_v59 = vsel %vm160_vm0, %v877_v17, %v670_v52  ;;  %v182_v5 = vsel %vm160_vm0, %v825_v6, %v671_v57  ;;  %v95_v52 = vld [vmem:[%s94_s17] sm:$0x1] }
  0x88   :  { %v161_v2 = vsel %vm160_vm0, %v34_v58, %v680_v54  ;;  %v192_v10 = vsel %vm160_vm0, %v827_v7, %v681_v60 }
  0x89   :  { %v163_v14 = vsel %vm162_vm1, %v161_v2, %v690_v63  ;;  %v193_v45 = vsel %vm162_vm1, %v192_v10, %v691_v8 }
  0x8c   :  { %v674_v49 = vpop.permute.xlu0 %673  ;;  %v984_v51 = vpop.permute.xlu2 %708 }
  0x8d   :  { %v684_v50 = vpop.permute.xlu1 %683  ;;  %v675_v53 = vunpack.i.l.bf16 %v674_v49  ;;  %v676_v61 = vunpack.i.h.bf16 %v674_v49  ;;  %v710_v6 = vunpack.i.l.bf16 %v984_v51  ;;  %v711_v7 = vunpack.i.h.bf16 %v984_v51 }
  0x8e   :  { %v685_v55 = vunpack.i.l.bf16 %v684_v50  ;;  %v686_v9 = vunpack.i.h.bf16 %v684_v50  ;;  %v301_v50 = vrot.slane %v193_v45, 5 }
  0x8f   :  { %v173_v0 = vsel %vm162_vm1, %v172_v59, %v675_v53  ;;  %v183_v11 = vsel %vm162_vm1, %v182_v5, %v676_v61 }
  0x90   :  { %v252_v3 = vsel %vm160_vm0, %v915_v25, %v685_v55  ;;  %v295_v12 = vrot.slane %v173_v0, 7  ;;  %v298_v25 = vrot.slane %v183_v11, 6  ;;  %v202_v27 = vsel %vm160_vm0, %v888_v18, %v686_v9 }
  0x91   :  { %v253_v15 = vsel %vm162_vm1, %v252_v3, %v695_v1 }
  0x92   :  { %v316_v30 = vrot.slane %v253_v15, 7  ;;  %v331_v35 = vsel %vm330_vm2, %v163_v14, %v295_v12 }
  0x94   :  { %v699_v56 = vpop.permute.xlu0 %698  ;;  %v724_v17 = vpop.permute.xlu2 %723 }
  0x95   :  { %v704_v62 = vpop.permute.xlu1 %703  ;;  %v700_v4 = vunpack.i.l.bf16 %v699_v56  ;;  %v701_v16 = vunpack.i.h.bf16 %v699_v56  ;;  %v726_v36 = vunpack.i.h.bf16 %v724_v17  ;;  %v725_v37 = vunpack.i.l.bf16 %v724_v17  ;;  %v662_v17 = vld [vmem:[%s1120_s3 + $0x34] sm:$0xf] }
  0x96   :  { %v706_v20 = vunpack.i.h.bf16 %v704_v62  ;;  %v705_v21 = vunpack.i.l.bf16 %v704_v62 }
  0x97   :  { %v262_v19 = vsel %vm160_vm0, %v912_v24, %v700_v4  ;;  %v212_v24 = vsel %vm160_vm0, %v910_v23, %v701_v16  ;;  %v644_v16 = vld [vmem:[%s1120_s3 + $0x30] sm:$0xf] }
  0x98   :  { %v263_v38 = vsel %vm162_vm1, %v262_v19, %v710_v6  ;;  %v272_v42 = vsel %vm160_vm0, %v950_v33, %v706_v20  ;;  %v242_v18 = vsel %vm160_vm0, %v953_v34, %v705_v21  ;;  %v203_v33 = vsel %vm162_vm1, %v202_v27, %v696_v13  ;;  %v663_v6 = vld [vmem:[%s1120_s3 + $0x34] sm:$0xf0]  ;;  %v646_v20 = vld [vmem:[%s1120_s3 + $0x38] sm:$0xf0] }
  0x99   :  { %v333_v34 = vsel %vm332_vm3, %v331_v35, %v298_v25  ;;  %v304_v54 = vrot.slane %v203_v33, 4  ;;  %v645_v19 = vor.u32 %v663_v6, %v644_v16  ;;  %v649_v21 = vor.u32 %v662_v17, %v646_v20  ;;  %v660_v25 = vld [vmem:[%s1120_s3 + $0x24] sm:$0xf]  ;;  %v658_v35 = vld [vmem:[%s1120_s3 + $0x14] sm:$0xf] }
  0x9a   :  { %v335_v62 = vsel %vm334_vm4, %v333_v34, %v301_v50  ;;  %v738_v20 = vld [vmem:[%s1122_s5 + $0x2] ss:$0 sm:$0xff] }
  0x9b   :  { %v337_v8 = vsel %vm336_vm5, %v335_v62, %v304_v54  ;;  %480 = vmatpush.bf16.msra.mxu1 %v645_v19  ;;  %493 = vmatpush.bf16.msra.mxu2 %v649_v21 }
  0x9c   :  { %v714_v22 = vpop.permute.xlu0 %713 }
  0x9d   :  { %v716_v28 = vunpack.i.h.bf16 %v714_v22  ;;  %v715_v29 = vunpack.i.l.bf16 %v714_v22  ;;  %v719_v31 = vpop.permute.xlu1 %718  ;;  %v661_v22 = vld [vmem:[%s1120_s3 + $0x24] sm:$0xf0] }
  0x9e   :  { %v721_v39 = vunpack.i.h.bf16 %v719_v31  ;;  %v720_v41 = vunpack.i.l.bf16 %v719_v31  ;;  %v659_v31 = vld [vmem:[%s1120_s3 + $0x14] sm:$0xf0] }
  0x9f   :  { %v282_v43 = vsel %vm160_vm0, %v917_v26, %v716_v28  ;;  %v222_v44 = vsel %vm160_vm0, %v948_v32, %v715_v29  ;;  %v213_v26 = vsel %vm162_vm1, %v212_v24, %v711_v7  ;;  %v319_v32 = vrot.slane %v263_v38, 6  ;;  %v636_v7 = vld [vmem:[%s1120_s3 + $0x20] sm:$0xf]  ;;  %v638_v28 = vld [vmem:[%s1120_s3 + $0x28] sm:$0xf0] }
  0xa0   :  { %v243_v23 = vsel %vm162_vm1, %v242_v18, %v720_v41  ;;  %v273_v46 = vsel %vm162_vm1, %v272_v42, %v721_v39  ;;  %v283_v48 = vsel %vm162_vm1, %v282_v43, %v726_v36  ;;  %v223_v49 = vsel %vm162_vm1, %v222_v44, %v725_v37  ;;  %v630_v37 = vld [vmem:[%s1120_s3 + $0x18] sm:$0xf0]  ;;  %v620_v38 = vld [vmem:[%s1120_s3] sm:$0xf]  ;;  %v657_v39 = vld [vmem:[%s1120_s3 + $0x4] sm:$0xf0] }
  0xa1   :  { %v344_v47 = vsel %vm330_vm2, %v243_v23, %v316_v30  ;;  %v322_v51 = vrot.slane %v273_v46, 5  ;;  %v307_v58 = vrot.slane %v213_v26, 3  ;;  %v325_v59 = vrot.slane %v283_v48, 4  ;;  %v628_v30 = vld [vmem:[%s1120_s3 + $0x10] sm:$0xf] }
  0xa2   :  { %v345_v55 = vsel %vm332_vm3, %v344_v47, %v319_v32  ;;  %v310_v60 = vrot.slane %v223_v49, 2  ;;  %v637_v27 = vor.u32 %v661_v22, %v636_v7  ;;  %v641_v29 = vor.u32 %v660_v25, %v638_v28  ;;  %v656_v41 = vld [vmem:[%s1120_s3 + $0x4] sm:$0xf]  ;;  %v622_v18 = vld [vmem:[%s1120_s3 + $0x8] sm:$0xf0] }
  0xa3   :  { %v346_v3 = vsel %vm334_vm4, %v345_v55, %v322_v51  ;;  %v339_v11 = vsel %vm338_vm6, %v337_v8, %v307_v58  ;;  %v629_v36 = vor.u32 %v659_v31, %v628_v30  ;;  %v633_v24 = vor.u32 %v658_v35, %v630_v37  ;;  %v737_v44 = vld [vmem:[%s1122_s5] ss:$0 sm:$0xff] }
  0xa4   :  { %v729_v53 = vpop.permute.xlu0 %728  ;;  %v341_v12 = vsel %vm340_vm7, %v339_v11, %v310_v60  ;;  %481 = vmatpush.bf16.msra.mxu1 %v637_v27  ;;  %494 = vmatpush.bf16.msra.mxu2 %v641_v29  ;;  %v621_v42 = vor.u32 %v657_v39, %v620_v38  ;;  %v625_v43 = vor.u32 %v656_v41, %v622_v18 }
  0xa5   :  { %v731_v56 = vunpack.i.h.bf16 %v729_v53  ;;  %v730_v57 = vunpack.i.l.bf16 %v729_v53  ;;  %v734_v61 = vpop.permute.xlu1 %733 }
  0xa6   :  { %v736_v1 = vunpack.i.h.bf16 %v734_v61  ;;  %v735_v2 = vunpack.i.l.bf16 %v734_v61 }
  0xa7   :  { %v292_v63 = vsel %vm160_vm0, %v966_v40, %v731_v56  ;;  %v232_v0 = vsel %vm160_vm0, %v95_v52, %v730_v57  ;;  %v347_v40 = vsel %vm336_vm5, %v346_v3, %v325_v59  ;;  %vm539_vm0 = vcmask 1024  }
  0xa8   :  { %v293_v4 = vsel %vm162_vm1, %v292_v63, %v736_v1  ;;  %v233_v5 = vsel %vm162_vm1, %v232_v0, %v735_v2  ;;  %482 = vmatpush.bf16.msra.mxu1 %v629_v36  ;;  %495 = vmatpush.bf16.msra.mxu2 %v633_v24  ;;  %v617_v0 = vld [vmem:[%s1122_s5 + $0x1] ss:$4 sm:$0x3] }
  0xa9   :  { %v328_v9 = vrot.slane %v293_v4, 3  ;;  %v313_v10 = vrot.slane %v233_v5, 1  ;;  %v428_v1 = vperm.slane %v617_v0, 0  ;;  %v504_v4 = vld [vmem:[%s1121_s4] sm:$0x3]  ;;  %v429_v5 = vperm.slane %v617_v0, 1 }
  0xab   :  { %v343_v13 = vsel %vm342_vm8, %v341_v12, %v313_v10  ;;  %v348_v14 = vsel %vm338_vm6, %v347_v40, %v328_v9  ;;  %v506_v9 = vperm.slane %v504_v4, 0  ;;  %v507_v12 = vperm.slane %v504_v4, 1 }
  0xac   :  { %v349_v15 = vpack.c.bf16 %v348_v14, %v343_v13  ;;  %483 = vmatpush.bf16.msra.mxu1 %v621_v42  ;;  %496 = vmatpush.bf16.msra.mxu2 %v625_v43 }
  0xae   :  { %616 = vmatmul.msk.bf16.vlgmr.msra.gmra.mxu0 %vm376_vm9, %v349_v15 }
 0x12b   :  { %v389_v45 = vpop.f32.mrf.mxu0 }
 0x12c   :  { %v390_v23 = vadd.f32 %v737_v44, %v389_v45 }
 0x12e   :  { %v394_v46 = vmax.f32 %v390_v23, 0.0 }
 0x130   :  { %v397_v33 = vsel %vm396_vm10, %v394_v46, -inf  ;;  %v405_v49 = vsel %vm404_vm11, %v394_v46, -inf }
 0x131   :  { %v398_v34 = vrot.slane %v397_v33, 4 }
 0x133   :  { %v391_v47 = vpop.f32.mrf.mxu0  ;;  %v399_v32 = vmax.f32 %v397_v33, %v398_v34 }
 0x134   :  { %v392_v26 = vadd.f32 %v737_v44, %v391_v47 }
 0x135   :  { %v400_v51 = vrot.slane %v399_v32, 2 }
 0x136   :  { %v395_v48 = vmax.f32 %v392_v26, 0.0 }
 0x137   :  { %v401_v54 = vmax.f32 %v399_v32, %v400_v51 }
 0x138   :  { %v407_v50 = vsel %vm406_vm12, %v395_v48, -inf }
 0x139   :  { %v408_v52 = vmax.f32 %v405_v49, %v407_v50  ;;  %v402_v57 = vrot.slane %v401_v54, 1 }
 0x13b   :  { %v409_v53 = vrot.slane %v408_v52, 4  ;;  %v403_v60 = vmax.f32 %v401_v54, %v402_v57 }
 0x13d   :  { %v410_v55 = vmax.f32 %v408_v52, %v409_v53 }
 0x13f   :  { %v411_v56 = vrot.slane %v410_v55, 2 }
 0x141   :  { %v412_v58 = vmax.f32 %v410_v55, %v411_v56 }
 0x143   :  { %v413_v59 = vrot.slane %v412_v58, 1 }
 0x145   :  { %v414_v61 = vmax.f32 %v412_v58, %v413_v59 }
 0x147   :  { %v415_v62 = vsel %vm330_vm2, %v403_v60, %v414_v61 }
 0x148   :  { %v416_v63 = vpack.c.bf16 %v415_v62, %v415_v62 }
 0x14a   :  { %650 = vmatmul.msk.bf16.vlgmr.msra.gmra.mxu1 %vm472_vm13, %v416_v63  ;;  %651 = vmatmul.msk.bf16.vlgmr.msra.gmra.mxu2 %vm472_vm13, %v416_v63 }
 0x1c7   :  { %v485_v2 = vpop.f32.mrf.mxu1 }
 0x1c8   :  { %v486_v3 = vadd.f32 %v485_v2, %v428_v1 }
 0x1ca   :  { %v502_v8 = vmax.f32 %v486_v3, 0.0 }
 0x1cc   :  { %v510_v13 = vmul.f32 %v506_v9, %v502_v8 }
 0x1cd   :  { %v498_v10 = vpop.f32.mrf.mxu2 }
 0x1ce   :  { %v499_v11 = vadd.f32 %v498_v10, %v429_v5  ;;  %v512_v16 = vsel %vm332_vm3, %v510_v13, 0.0 }
 0x1cf   :  { %v487_v40 = vpop.f32.mrf.mxu1 }
 0x1d0   :  { %v503_v14 = vmax.f32 %v499_v11, 0.0 }
 0x1d2   :  { %v511_v15 = vmul.f32 %v507_v12, %v503_v14 }
 0x1d4   :  { %v513_v6 = vsel %vm332_vm3, %v511_v15, 0.0 }
 0x1d5   :  { %v500_v17 = vpop.f32.mrf.mxu2  ;;  %v514_v19 = vadd.f32 %v513_v6, %v512_v16 }
 0x1d7   :  { %515 = vadd.xlane.f32.xlu2 %v514_v19 }
 0x24a   :  { %v516_v21 = vpop.xlane.xlu2 %515 }
 0x24b   :  { %v519_v7 = vadd.f32 %v738_v20, %v516_v21 }
 0x24d   :  { %v652_v22 = vmul.f32 -1.442695, %v519_v7 }
 0x24f   :  { %739 = vpow2.f32 %v652_v22 }
 0x255   :  { %v740_v25 = vpop.eup %739 }
 0x256   :  { %v523_v27 = vadd.f32 1.0, %v740_v25 }
 0x258   :  { %741 = vrcp.f32 %v523_v27  ;;  %v535_v31 = vand.u32 2147483648, %v523_v27  ;;  %v533_v36 = vand.u32 2147483647, %v523_v27  ;;  %vm529_vm15 = vweird.f32 %v523_v27 }
 0x25a   :  { %v536_v24 = vor.u32 1.1754944e-38, %v535_v31  ;;  %vm534_vm2 = vcmp.eq.f32.partialorder %v533_v36, 8.507059e+37 }
 0x25e   :  { %v742_v28 = vpop.eup %741 }
 0x25f   :  { %v525_v29 = vmul.f32 %v742_v28, %v523_v27  ;;  %vm530_vm14 = vweird.f32 %v742_v28 }
 0x260   :  { %vm531_vm1 = vmor %vm529_vm15, %vm530_vm14 }
 0x261   :  { %v526_v30 = vsub.f32 1.0, %v525_v29 }
 0x263   :  { %v527_v35 = vmul.f32 %v742_v28, %v526_v30 }
 0x265   :  { %v528_v37 = vadd.f32 %v742_v28, %v527_v35 }
 0x267   :  { %v532_v38 = vsel %vm531_vm1, %v742_v28, %v528_v37 }
 0x268   :  { %v537_v39 = vsel %vm534_vm2, %v536_v24, %v532_v38 }
 0x269   :  { %540 = vst.msk [vmem:[%s1123_s6] sm:$0x3] %vm539_vm0, %v537_v39 }

</bundles_post_ra>
